<compile_context>
chip_gen: v7x
topology: tpu7x:2x2x1
jax: 0.10.0
libtpu: 0.0.40
codegen_flags: <defaults>
</compile_context>

<pallas_src>
import math
import functools

import jax
import jax.numpy as jnp
from jax.experimental import pallas as pl
from jax.experimental.pallas import tpu as pltpu


_LANE = 1024          # lane-dense slab width (multiple of 128)
_MAX_ROW_TILE = 512   # rows per grid step (multiple of 8); 512*1024*4 B = 2 MiB/tile
_UNIFORM_BITS = 24    # bits of uniform randomness per output sample


def _round_up(x: int, m: int) -> int:
    return (x + m - 1) // m * m


def _erfinv_f32(x):
    """Single-precision erfinv (Giles 2012) using only log/sqrt/mul/add/select."""
    w = -jnp.log((1.0 - x) * (1.0 + x))

    # central branch (w < 5), covers ~99.96% of samples
    wa = w - 2.5
    pa = jnp.float32(2.81022636e-08)
    for c in (3.43273939e-07, -3.5233877e-06, -4.39150654e-06, 2.1858087e-04,
              -1.25372503e-03, -4.17768164e-03, 2.46640727e-01, 1.50140941e+00):
        pa = pa * wa + c

    # tail branch (w >= 5)
    wb = jnp.sqrt(w) - 3.0
    pb = jnp.float32(-2.00214257e-04)
    for c in (1.00950558e-04, 1.34934322e-03, -3.67342844e-03, 5.73950773e-03,
              -7.62246130e-03, 9.43887047e-03, 1.00167406e+00, 2.83297682e+00):
        pb = pb * wb + c

    return jnp.where(w < 5.0, pa, pb) * x


def _randn_kernel(bits_ref, o_ref, *, scale):
    """bits_ref: (row_tile, LANE) int32 uniform in [0, 2^24); o_ref: f32 normals."""
    b = bits_ref[...].astype(jnp.float32)
    # symmetric uniform in (-1, 1):  x = (b + 0.5) / 2^23 - 1
    x = b * (2.0 ** -(_UNIFORM_BITS - 1)) + (2.0 ** -_UNIFORM_BITS - 1.0)
    # standard normal via inverse CDF: z = sqrt(2) * erfinv(x);
    # the 1/sqrt(n) scale stays fused in-kernel (rides free in spare VPU slots).
    o_ref[...] = _erfinv_f32(x) * scale


def random_set_generator(latent, n: int, set_channels: int, key, *,
                         use_kernel=None):
    """Pallas equivalent of RandomSetGenerator.forward(latent, n)."""
    batch = latent.shape[0]
    total = batch * n * set_channels
    inv_sqrt_n = 1.0 / math.sqrt(n)

    if use_kernel is None:
        # size-gated fallback: kernel dispatch overhead dwarfs tiny generations
        use_kernel = total >= (1 << 16)
    if not use_kernel:
        pts = jax.random.normal(key, (batch, n, set_channels), dtype=jnp.float32)
        return pts * jnp.float32(inv_sqrt_n)

    rows_needed = pl.cdiv(total, _LANE)
    row_tile = min(_MAX_ROW_TILE, _round_up(rows_needed, 8))
    rows = _round_up(rows_needed, row_tile)
    grid_rows = rows // row_tile

    # uniform 24-bit integers; converted to normals inside the kernel
    bits = jax.random.randint(key, (rows, _LANE), minval=0,
                              maxval=1 << _UNIFORM_BITS, dtype=jnp.int32)

    kernel = functools.partial(_randn_kernel,
                               scale=math.sqrt(2.0) * inv_sqrt_n)

    slab = pl.pallas_call(
        kernel,
        out_shape=jax.ShapeDtypeStruct((rows, _LANE), jnp.float32),
        grid=(grid_rows,),
        in_specs=[pl.BlockSpec((row_tile, _LANE), lambda i: (i, 0))],
        out_specs=pl.BlockSpec((row_tile, _LANE), lambda i: (i, 0)),
        compiler_params=pltpu.CompilerParams(
            dimension_semantics=("parallel",),
            vmem_limit_bytes=32 * 1024 * 1024,
        ),
    )(bits)

    return slab.reshape(-1)[:total].reshape(batch, n, set_channels)


if __name__ == "__main__":
    key = jax.random.PRNGKey(0)
    batch_size = 2
    latent_dim = 32
    n = 8
    set_channels = 32

    k_latent, k_noise = jax.random.split(key)
    # `latent` is only used for its batch dimension (matching the PyTorch module).
    latent = jax.random.normal(k_latent, (batch_size, latent_dim), dtype=jnp.float32)

    # force the Pallas path so the kernel is exercised at this small demo shape
    points = random_set_generator(latent, n, set_channels, k_noise, use_kernel=True)
    points = jax.block_until_ready(points)

    assert points.shape == (batch_size, n, set_channels)
    assert points.dtype == jnp.float32
    assert bool(jnp.all(jnp.isfinite(points)))
    # distributional sanity: samples ~ N(0, 1/n)  (no bit-exact match to torch.randn)
    assert abs(float(jnp.mean(points))) < 0.2
    scaled_std = float(jnp.std(points)) * math.sqrt(n)
    assert 0.5 < scaled_std < 1.5

    print("KERNEL_OK")
</pallas_src>

<mosaic_0001>
module attributes {stable_mosaic.version = 11 : i64} {
  func.func @_randn_kernel(%arg0: i32, %arg1: memref<8x1024xi32, #tpu.memory_space<vmem>>, %arg2: memref<8x1024xf32, #tpu.memory_space<vmem>>) attributes {dimension_semantics = [#tpu.dimension_semantics<parallel>], iteration_bounds = array<i64: 1>, scalar_prefetch = 0 : i64, scratch_operands = 0 : i64, tpu.core_type = #tpu.core_type<tc>, window_params = [{transform_indices = @transform_0, window_bounds = array<i64: 8, 1024>}, {transform_indices = @transform_1, window_bounds = array<i64: 8, 1024>}]} {
    %c0 = arith.constant 0 : index
    %c0_0 = arith.constant 0 : index
    %0 = vector.load %arg1[%c0, %c0_0] : memref<8x1024xi32, #tpu.memory_space<vmem>>, vector<8x1024xi32>
    %1 = arith.sitofp %0 : vector<8x1024xi32> to vector<8x1024xf32>
    %cst = arith.constant 1.1920929E-7 : f32
    %2 = vector.broadcast %cst : f32 to vector<8x1024xf32>
    %3 = arith.mulf %1, %2 : vector<8x1024xf32>
    %cst_1 = arith.constant -0.99999994 : f32
    %4 = vector.broadcast %cst_1 : f32 to vector<8x1024xf32>
    %5 = arith.addf %3, %4 : vector<8x1024xf32>
    %cst_2 = arith.constant 1.000000e+00 : f32
    %6 = vector.broadcast %cst_2 : f32 to vector<8x1024xf32>
    %7 = arith.subf %6, %5 : vector<8x1024xf32>
    %cst_3 = arith.constant 1.000000e+00 : f32
    %8 = vector.broadcast %cst_3 : f32 to vector<8x1024xf32>
    %9 = arith.addf %8, %5 : vector<8x1024xf32>
    %10 = arith.mulf %7, %9 : vector<8x1024xf32>
    %11 = math.log %10 : vector<8x1024xf32>
    %cst_4 = arith.constant 0.000000e+00 : f32
    %12 = vector.broadcast %cst_4 : f32 to vector<8x1024xf32>
    %13 = arith.subf %12, %11 : vector<8x1024xf32>
    %cst_5 = arith.constant 2.500000e+00 : f32
    %14 = vector.broadcast %cst_5 : f32 to vector<8x1024xf32>
    %15 = arith.subf %13, %14 : vector<8x1024xf32>
    %cst_6 = arith.constant 2.81022636E-8 : f32
    %16 = vector.broadcast %cst_6 : f32 to vector<8x1024xf32>
    %17 = arith.mulf %16, %15 : vector<8x1024xf32>
    %cst_7 = arith.constant 3.43273939E-7 : f32
    %18 = vector.broadcast %cst_7 : f32 to vector<8x1024xf32>
    %19 = arith.addf %17, %18 : vector<8x1024xf32>
    %20 = arith.mulf %19, %15 : vector<8x1024xf32>
    %cst_8 = arith.constant -3.5233877E-6 : f32
    %21 = vector.broadcast %cst_8 : f32 to vector<8x1024xf32>
    %22 = arith.addf %20, %21 : vector<8x1024xf32>
    %23 = arith.mulf %22, %15 : vector<8x1024xf32>
    %cst_9 = arith.constant -4.39150654E-6 : f32
    %24 = vector.broadcast %cst_9 : f32 to vector<8x1024xf32>
    %25 = arith.addf %23, %24 : vector<8x1024xf32>
    %26 = arith.mulf %25, %15 : vector<8x1024xf32>
    %cst_10 = arith.constant 2.1858087E-4 : f32
    %27 = vector.broadcast %cst_10 : f32 to vector<8x1024xf32>
    %28 = arith.addf %26, %27 : vector<8x1024xf32>
    %29 = arith.mulf %28, %15 : vector<8x1024xf32>
    %cst_11 = arith.constant -0.00125372503 : f32
    %30 = vector.broadcast %cst_11 : f32 to vector<8x1024xf32>
    %31 = arith.addf %29, %30 : vector<8x1024xf32>
    %32 = arith.mulf %31, %15 : vector<8x1024xf32>
    %cst_12 = arith.constant -0.00417768164 : f32
    %33 = vector.broadcast %cst_12 : f32 to vector<8x1024xf32>
    %34 = arith.addf %32, %33 : vector<8x1024xf32>
    %35 = arith.mulf %34, %15 : vector<8x1024xf32>
    %cst_13 = arith.constant 0.246640727 : f32
    %36 = vector.broadcast %cst_13 : f32 to vector<8x1024xf32>
    %37 = arith.addf %35, %36 : vector<8x1024xf32>
    %38 = arith.mulf %37, %15 : vector<8x1024xf32>
    %cst_14 = arith.constant 1.50140941 : f32
    %39 = vector.broadcast %cst_14 : f32 to vector<8x1024xf32>
    %40 = arith.addf %38, %39 : vector<8x1024xf32>
    %41 = math.sqrt %13 : vector<8x1024xf32>
    %cst_15 = arith.constant 3.000000e+00 : f32
    %42 = vector.broadcast %cst_15 : f32 to vector<8x1024xf32>
    %43 = arith.subf %41, %42 : vector<8x1024xf32>
    %cst_16 = arith.constant -2.00214257E-4 : f32
    %44 = vector.broadcast %cst_16 : f32 to vector<8x1024xf32>
    %45 = arith.mulf %44, %43 : vector<8x1024xf32>
    %cst_17 = arith.constant 1.00950558E-4 : f32
    %46 = vector.broadcast %cst_17 : f32 to vector<8x1024xf32>
    %47 = arith.addf %45, %46 : vector<8x1024xf32>
    %48 = arith.mulf %47, %43 : vector<8x1024xf32>
    %cst_18 = arith.constant 0.00134934322 : f32
    %49 = vector.broadcast %cst_18 : f32 to vector<8x1024xf32>
    %50 = arith.addf %48, %49 : vector<8x1024xf32>
    %51 = arith.mulf %50, %43 : vector<8x1024xf32>
    %cst_19 = arith.constant -0.00367342844 : f32
    %52 = vector.broadcast %cst_19 : f32 to vector<8x1024xf32>
    %53 = arith.addf %51, %52 : vector<8x1024xf32>
    %54 = arith.mulf %53, %43 : vector<8x1024xf32>
    %cst_20 = arith.constant 0.00573950773 : f32
    %55 = vector.broadcast %cst_20 : f32 to vector<8x1024xf32>
    %56 = arith.addf %54, %55 : vector<8x1024xf32>
    %57 = arith.mulf %56, %43 : vector<8x1024xf32>
    %cst_21 = arith.constant -0.0076224613 : f32
    %58 = vector.broadcast %cst_21 : f32 to vector<8x1024xf32>
    %59 = arith.addf %57, %58 : vector<8x1024xf32>
    %60 = arith.mulf %59, %43 : vector<8x1024xf32>
    %cst_22 = arith.constant 0.00943887047 : f32
    %61 = vector.broadcast %cst_22 : f32 to vector<8x1024xf32>
    %62 = arith.addf %60, %61 : vector<8x1024xf32>
    %63 = arith.mulf %62, %43 : vector<8x1024xf32>
    %cst_23 = arith.constant 1.00167406 : f32
    %64 = vector.broadcast %cst_23 : f32 to vector<8x1024xf32>
    %65 = arith.addf %63, %64 : vector<8x1024xf32>
    %66 = arith.mulf %65, %43 : vector<8x1024xf32>
    %cst_24 = arith.constant 2.83297682 : f32
    %67 = vector.broadcast %cst_24 : f32 to vector<8x1024xf32>
    %68 = arith.addf %66, %67 : vector<8x1024xf32>
    %cst_25 = arith.constant 5.000000e+00 : f32
    %69 = vector.broadcast %cst_25 : f32 to vector<8x1024xf32>
    %70 = arith.cmpf olt, %13, %69 : vector<8x1024xf32>
    %71 = arith.select %70, %40, %68 : vector<8x1024xi1>, vector<8x1024xf32>
    %72 = arith.mulf %71, %5 : vector<8x1024xf32>
    %cst_26 = arith.constant 5.000000e-01 : f32
    %73 = vector.broadcast %cst_26 : f32 to vector<8x1024xf32>
    %74 = arith.mulf %72, %73 : vector<8x1024xf32>
    %c0_27 = arith.constant 0 : index
    %c0_28 = arith.constant 0 : index
    %75 = vector.load %arg2[%c0_27, %c0_28] : memref<8x1024xf32, #tpu.memory_space<vmem>>, vector<8x1024xf32>
    tpu.vector_store %arg2[%c0_27, %c0_28], %74 {strides = array<i32>} : memref<8x1024xf32, #tpu.memory_space<vmem>>, vector<8x1024xf32>,
    return
  }
  func.func @transform_0(%arg0: i32) -> (i32, i32) {
    %c0_i32 = arith.constant 0 : i32
    %c0_i32_0 = arith.constant 0 : i32
    return %arg0, %c0_i32 : i32, i32
  }
  func.func @transform_1(%arg0: i32) -> (i32, i32) {
    %c0_i32 = arith.constant 0 : i32
    %c0_i32_0 = arith.constant 0 : i32
    return %arg0, %c0_i32 : i32, i32
  }
}

</mosaic_0001>

<bundles_post_ra>
// kernel: tpu_custom_call.1
= control target key start
LH: loop header
LB: loop body
LE: loop exit
PB: predicated region body
PF: predicated region fallthrough
CT: control target
= control target key end

     0   :  { %6 = vsyncpa [#allocation3], 0  ;;  %s931_s0 = inlined_call_operand.hbm [shape: s32[8,1024], index: 0, kind: input, shape index: {}]   ;;  %s932_s1 = inlined_call_operand.hbm [shape: f32[8,1024], index: 1, kind: output, shape index: {}]  }
   0x1   :  { %7 = vsyncpa [#allocation4], 0  ;;  %s582_s6 = smov [#allocation2]   ;;  %s534_s10 = scalar_lea.hbm %s931_s0, 1024 }
   0x2   :  { %s14_s7 = sshll.u32 %s582_s6, 4  ;;  %p535_p0 = scmp.ne.s32.totalorder %s931_s0, %s534_s10  ;;  %s15_s7 = int_to_ptr.vmem [resolvable:$true] %s14_s7 }
   0x3   :  { %p538_p1 = scmp.lt.u32.totalorder %s534_s10, %s931_s0 }
   0x5   :  { %p540_p2 = pnand %p538_p1, %p535_p0 }
   0x7   :  { %543 = shalt.err (!%p540_p2)
}
   0x8   :  { %s544_s15 = scalar_lea.vmem %s15_s7, 1024  ;;  %p549_p4 = scmp.lt.s32.totalorder %s15_s7, %s15_s7 }
   0x9   :  { %p545_p3 = scmp.ne.s32.totalorder %s15_s7, %s544_s15  ;;  %p550_p5 = scmp.lt.s32.totalorder %s544_s15, %s544_s15 }
   0xb   :  { %p551_p6 = por %p550_p5, %p549_p4 }
   0xd   :  { %p552_p7 = pnand %p551_p6, %p545_p3 }
   0xf   :  { %555 = shalt.err (!%p552_p7)
}
  0x10   :  { %17 = dma.hbm_to_vmem [thread:$0]  %s931_s0, 1024, %s15_s7, [#allocation3]  }
  0x11   :  { %578 = dma.done.wait [#allocation3], 1024  }
  0x12   :  { %579 = vsyncadd [#allocation3], 4294966272  ;;  %v21_v0 = vld [vmem:[#allocation2] sm:$0xff]  ;;  %v22_v1 = vld [vmem:[#allocation2 + $0x8] sm:$0xff]  ;;  %s583_s0 = smov [#allocation5]  }
  0x13   :  { %v23_v2 = vld [vmem:[#allocation2 + $0x10] sm:$0xff]  ;;  %v29_v3 = vcvt.s32.f32 %v21_v0  ;;  %v30_v4 = vcvt.s32.f32 %v22_v1  ;;  %v24_v6 = vld [vmem:[#allocation2 + $0x18] sm:$0xff]  ;;  %v25_v7 = vld [vmem:[#allocation2 + $0x20] sm:$0xff]  ;;  %s475_s18 = sshll.u32 %s583_s0, 4  ;;  %s476_s18 = int_to_ptr.vmem [resolvable:$true] %s475_s18 }
  0x14   :  { %v31_v5 = vcvt.s32.f32 %v23_v2  ;;  %v26_v8 = vld [vmem:[#allocation2 + $0x28] sm:$0xff]  ;;  %v32_v9 = vcvt.s32.f32 %v24_v6  ;;  %v33_v10 = vcvt.s32.f32 %v25_v7  ;;  %v27_v34 = vld [vmem:[#allocation2 + $0x30] sm:$0xff]  ;;  %v28_v42 = vld [vmem:[#allocation2 + $0x38] sm:$0xff]  ;;  %s556_s19 = scalar_lea.vmem %s476_s18, 1024  ;;  %p561_p9 = scmp.lt.s32.totalorder %s476_s18, %s476_s18 }
  0x15   :  { %v34_v11 = vcvt.s32.f32 %v26_v8  ;;  %v37_v12 = vmul.f32 1.1920929e-07, %v29_v3  ;;  %v38_v13 = vmul.f32 1.1920929e-07, %v30_v4  ;;  %v35_v39 = vcvt.s32.f32 %v27_v34  ;;  %p557_p8 = scmp.ne.s32.totalorder %s476_s18, %s556_s19  ;;  %p562_p10 = scmp.lt.s32.totalorder %s556_s19, %s556_s19 }
  0x16   :  { %v39_v14 = vmul.f32 1.1920929e-07, %v31_v5  ;;  %v40_v15 = vmul.f32 1.1920929e-07, %v32_v9  ;;  %v41_v16 = vmul.f32 1.1920929e-07, %v33_v10  ;;  %v36_v45 = vcvt.s32.f32 %v28_v42 }
  0x17   :  { %v42_v17 = vmul.f32 1.1920929e-07, %v34_v11  ;;  %v606_v18 = vadd.f32 -0.99999994, %v37_v12  ;;  %v608_v19 = vadd.f32 -0.99999994, %v38_v13  ;;  %v43_v44 = vmul.f32 1.1920929e-07, %v35_v39  ;;  %p563_p11 = por %p562_p10, %p561_p9 }
  0x18   :  { %v610_v20 = vadd.f32 -0.99999994, %v39_v14  ;;  %v612_v21 = vadd.f32 -0.99999994, %v40_v15  ;;  %v614_v22 = vadd.f32 -0.99999994, %v41_v16 }
  0x19   :  { %v53_v23 = vsub.f32 1.0, %v606_v18  ;;  %v61_v24 = vadd.f32 1.0, %v606_v18  ;;  %v54_v25 = vsub.f32 1.0, %v608_v19  ;;  %v62_v26 = vadd.f32 1.0, %v608_v19  ;;  %p564_p12 = pnand %p563_p11, %p557_p8 }
  0x1a   :  { %v55_v27 = vsub.f32 1.0, %v610_v20  ;;  %v63_v28 = vadd.f32 1.0, %v610_v20  ;;  %v56_v29 = vsub.f32 1.0, %v612_v21  ;;  %v64_v30 = vadd.f32 1.0, %v612_v21 }
  0x1b   :  { %v69_v31 = vmul.f32 %v61_v24, %v53_v23  ;;  %v70_v32 = vmul.f32 %v62_v26, %v54_v25  ;;  %v624_v33 = vadd.f32 -0.99999994, %v42_v17  ;;  %v57_v37 = vsub.f32 1.0, %v614_v22 }
  0x1c   :  { %v71_v35 = vmul.f32 %v63_v28, %v55_v27  ;;  %v72_v36 = vmul.f32 %v64_v30, %v56_v29  ;;  %v65_v38 = vadd.f32 1.0, %v614_v22  ;;  %v630_v47 = vadd.f32 -0.99999994, %v43_v44 }
  0x1d   :  { %502 = vlog2.f32 %v69_v31  ;;  %v58_v40 = vsub.f32 1.0, %v624_v33  ;;  %v66_v41 = vadd.f32 1.0, %v624_v33  ;;  %v44_v48 = vmul.f32 1.1920929e-07, %v36_v45 }
  0x1e   :  { %504 = vlog2.f32 %v70_v32  ;;  %v73_v43 = vmul.f32 %v65_v38, %v57_v37  ;;  %v59_v56 = vsub.f32 1.0, %v630_v47  ;;  %v67_v61 = vadd.f32 1.0, %v630_v47 }
  0x1f   :  { %506 = vlog2.f32 %v71_v35  ;;  %v74_v46 = vmul.f32 %v66_v41, %v58_v40  ;;  %v635_v57 = vadd.f32 -0.99999994, %v44_v48 }
  0x20   :  { %508 = vlog2.f32 %v72_v36  ;;  %v656_v7 = vmul.f32 %v67_v61, %v59_v56 }
  0x21   :  { %510 = vlog2.f32 %v73_v43  ;;  %v60_v1 = vsub.f32 1.0, %v635_v57  ;;  %v68_v2 = vadd.f32 1.0, %v635_v57 }
  0x22   :  { %512 = vlog2.f32 %v74_v46 }
  0x23   :  { %v678_v29 = vmul.f32 %v68_v2, %v60_v1 }
  0x27   :  { %v503_v49 = vpop.eup %502 }
  0x28   :  { %v505_v50 = vpop.eup %504  ;;  %v78_v51 = vmul.f32 0.6931472, %v503_v49 }
  0x29   :  { %v507_v52 = vpop.eup %506  ;;  %v80_v53 = vmul.f32 0.6931472, %v505_v50 }
  0x2a   :  { %v509_v54 = vpop.eup %508  ;;  %v632_v55 = vsub.f32 0.0, %v78_v51  ;;  %v82_v59 = vmul.f32 0.6931472, %v507_v52 }
  0x2b   :  { %v637_v58 = vsub.f32 0.0, %v80_v53  ;;  %v84_v60 = vmul.f32 0.6931472, %v509_v54  ;;  %v511_v3 = vpop.eup %510 }
  0x2c   :  { %v641_v62 = vadd.f32 -2.5, %v632_v55  ;;  %514 = vrsqrt.f32 %v632_v55  ;;  %v652_v5 = vsub.f32 0.0, %v82_v59  ;;  %vm239_vm0 = vcmp.eq.f32.partialorder %v632_v55, inf  ;;  %v513_v10 = vpop.eup %512 }
  0x2d   :  { %v645_v63 = vadd.f32 -2.5, %v637_v58  ;;  %516 = vrsqrt.f32 %v637_v58  ;;  %v654_v6 = vsub.f32 0.0, %v84_v60  ;;  %vm241_vm1 = vcmp.eq.f32.partialorder %v632_v55, 0.0 }
  0x2e   :  { %v109_v0 = vmul.f32 2.8102264e-08, %v641_v62  ;;  %v242_v9 = vand.u32 2147483648, %v632_v55  ;;  %vm246_vm2 = vcmp.eq.f32.partialorder %v637_v58, inf  ;;  %v663_v12 = vadd.f32 -2.5, %v652_v5 }
  0x2f   :  { %v110_v4 = vmul.f32 2.8102264e-08, %v645_v63  ;;  %518 = vrsqrt.f32 %v652_v5  ;;  %vm248_vm3 = vcmp.eq.f32.partialorder %v637_v58, 0.0  ;;  %v249_v14 = vand.u32 2147483648, %v637_v58 }
  0x30   :  { %v117_v8 = vadd.f32 3.4327394e-07, %v109_v0  ;;  %v86_v15 = vmul.f32 0.6931472, %v511_v3  ;;  %v111_v17 = vmul.f32 2.8102264e-08, %v663_v12  ;;  %520 = vrsqrt.f32 %v654_v6 }
  0x31   :  { %v118_v11 = vadd.f32 3.4327394e-07, %v110_v4  ;;  %v672_v23 = vadd.f32 -2.5, %v654_v6  ;;  %vm253_vm4 = vcmp.eq.f32.partialorder %v652_v5, inf  ;;  %vm255_vm5 = vcmp.eq.f32.partialorder %v652_v5, 0.0 }
  0x32   :  { %v125_v13 = vmul.f32 %v641_v62, %v117_v8  ;;  %v88_v25 = vmul.f32 0.6931472, %v513_v10  ;;  %v119_v27 = vadd.f32 3.4327394e-07, %v111_v17  ;;  %v256_v32 = vand.u32 2147483648, %v652_v5 }
  0x33   :  { %v126_v16 = vmul.f32 %v645_v63, %v118_v11  ;;  %v112_v28 = vmul.f32 2.8102264e-08, %v672_v23  ;;  %v263_v34 = vand.u32 2147483648, %v654_v6  ;;  %v683_v35 = vsub.f32 0.0, %v86_v15 }
  0x34   :  { %v133_v24 = vadd.f32 -3.5233877e-06, %v125_v13  ;;  %v127_v39 = vmul.f32 %v663_v12, %v119_v27  ;;  %vm260_vm6 = vcmp.eq.f32.partialorder %v654_v6, inf  ;;  %v693_v44 = vsub.f32 0.0, %v88_v25 }
  0x35   :  { %v134_v26 = vadd.f32 -3.5233877e-06, %v126_v16  ;;  %v120_v40 = vadd.f32 3.4327394e-07, %v112_v28  ;;  %v691_v43 = vadd.f32 -2.5, %v683_v35  ;;  %vm262_vm7 = vcmp.eq.f32.partialorder %v654_v6, 0.0 }
  0x36   :  { %v515_v30 = vpop.eup %514  ;;  %v141_v31 = vmul.f32 %v641_v62, %v133_v24  ;;  %v135_v48 = vadd.f32 -3.5233877e-06, %v127_v39  ;;  %522 = vrsqrt.f32 %v683_v35  ;;  %vm267_vm8 = vcmp.eq.f32.partialorder %v683_v35, inf }
  0x37   :  { %v517_v36 = vpop.eup %516  ;;  %v238_v37 = vmul.f32 %v515_v30, %v632_v55  ;;  %v142_v38 = vmul.f32 %v645_v63, %v134_v26  ;;  %v128_v49 = vmul.f32 %v672_v23, %v120_v40  ;;  %524 = vrsqrt.f32 %v693_v44 }
  0x38   :  { %v149_v41 = vadd.f32 -4.3915065e-06, %v141_v31  ;;  %v245_v42 = vmul.f32 %v517_v36, %v637_v58  ;;  %v143_v60 = vmul.f32 %v663_v12, %v135_v48  ;;  %526 = vlog2.f32 %v656_v7 }
  0x39   :  { %v240_v45 = vsel %vm239_vm0, %v632_v55, %v238_v37  ;;  %v150_v46 = vadd.f32 -4.3915065e-06, %v142_v38  ;;  %v519_v53 = vpop.eup %518  ;;  %v136_v2 = vadd.f32 -3.5233877e-06, %v128_v49  ;;  %528 = vlog2.f32 %v678_v29 }
  0x3a   :  { %v157_v50 = vmul.f32 %v641_v62, %v149_v41  ;;  %v243_v51 = vsel %vm241_vm1, %v242_v9, %v240_v45  ;;  %v247_v52 = vsel %vm246_vm2, %v637_v58, %v245_v42  ;;  %v252_v1 = vmul.f32 %v519_v53, %v652_v5  ;;  %v521_v3 = vpop.eup %520 }
  0x3b   :  { %v707_v54 = vadd.f32 -3.0, %v243_v51  ;;  %v158_v56 = vmul.f32 %v645_v63, %v150_v46  ;;  %v250_v59 = vsel %vm248_vm3, %v249_v14, %v247_v52  ;;  %v151_v9 = vadd.f32 -4.3915065e-06, %v143_v60 }
  0x3c   :  { %v165_v61 = vadd.f32 0.00021858087, %v157_v50  ;;  %v713_v0 = vadd.f32 -3.0, %v250_v59  ;;  %v254_v13 = vsel %vm253_vm4, %v652_v5, %v252_v1  ;;  %v144_v14 = vmul.f32 %v672_v23, %v136_v2 }
  0x3d   :  { %v301_v4 = vmul.f32 -0.00020021426, %v707_v54  ;;  %v166_v8 = vadd.f32 0.00021858087, %v158_v56  ;;  %v159_v17 = vmul.f32 %v663_v12, %v151_v9  ;;  %v257_v24 = vsel %vm255_vm5, %v256_v32, %v254_v13 }
  0x3e   :  { %v173_v10 = vmul.f32 %v641_v62, %v165_v61  ;;  %v302_v11 = vmul.f32 -0.00020021426, %v713_v0  ;;  %v728_v27 = vadd.f32 -3.0, %v257_v24  ;;  %v259_v28 = vmul.f32 %v521_v3, %v654_v6 }
  0x3f   :  { %v309_v15 = vadd.f32 0.00010095056, %v301_v4  ;;  %v174_v16 = vmul.f32 %v645_v63, %v166_v8  ;;  %v167_v36 = vadd.f32 0.00021858087, %v159_v17  ;;  %v152_v37 = vadd.f32 -4.3915065e-06, %v144_v14 }
  0x40   :  { %v181_v25 = vadd.f32 -0.001253725, %v173_v10  ;;  %v310_v26 = vadd.f32 0.00010095056, %v302_v11  ;;  %v303_v40 = vmul.f32 -0.00020021426, %v728_v27  ;;  %v261_v32 = vsel %vm260_vm6, %v654_v6, %v259_v28  ;;  %v523_v48 = vpop.eup %522 }
  0x41   :  { %v317_v30 = vmul.f32 %v707_v54, %v309_v15  ;;  %v182_v31 = vadd.f32 -0.001253725, %v174_v16  ;;  %v175_v45 = vmul.f32 %v663_v12, %v167_v36  ;;  %v160_v46 = vmul.f32 %v672_v23, %v152_v37  ;;  %v525_v4 = vpop.eup %524 }
  0x42   :  { %v189_v38 = vmul.f32 %v641_v62, %v181_v25  ;;  %v318_v39 = vmul.f32 %v713_v0, %v310_v26  ;;  %v311_v51 = vadd.f32 0.00010095056, %v303_v40  ;;  %v264_v52 = vsel %vm262_vm7, %v263_v34, %v261_v32 }
  0x43   :  { %v325_v41 = vadd.f32 0.0013493432, %v317_v30  ;;  %v190_v42 = vmul.f32 %v645_v63, %v182_v31  ;;  %v183_v59 = vadd.f32 -0.001253725, %v175_v45  ;;  %v168_v60 = vadd.f32 0.00021858087, %v160_v46 }
  0x44   :  { %v197_v49 = vadd.f32 -0.0041776816, %v189_v38  ;;  %v326_v50 = vadd.f32 0.0013493432, %v318_v39  ;;  %v319_v2 = vmul.f32 %v728_v27, %v311_v51  ;;  %v749_v3 = vadd.f32 -3.0, %v264_v52 }
  0x45   :  { %v333_v53 = vmul.f32 %v707_v54, %v325_v41  ;;  %v198_v56 = vadd.f32 -0.0041776816, %v190_v42  ;;  %v191_v10 = vmul.f32 %v663_v12, %v183_v59  ;;  %v176_v34 = vmul.f32 %v672_v23, %v168_v60 }
  0x46   :  { %v205_v61 = vmul.f32 %v641_v62, %v197_v49  ;;  %v334_v1 = vmul.f32 %v713_v0, %v326_v50  ;;  %v327_v14 = vadd.f32 0.0013493432, %v319_v2  ;;  %v304_v28 = vmul.f32 -0.00020021426, %v749_v3  ;;  %v777_v2 = vpop.eup %526 }
  0x47   :  { %v341_v8 = vadd.f32 -0.0036734284, %v333_v53  ;;  %v206_v9 = vmul.f32 %v645_v63, %v198_v56  ;;  %v199_v17 = vadd.f32 -0.0041776816, %v191_v10  ;;  %v184_v24 = vadd.f32 -0.001253725, %v176_v34 }
  0x48   :  { %v213_v11 = vadd.f32 0.24664073, %v205_v61  ;;  %v342_v13 = vadd.f32 -0.0036734284, %v334_v1  ;;  %v335_v26 = vmul.f32 %v728_v27, %v327_v14  ;;  %v113_v30 = vmul.f32 2.8102264e-08, %v691_v43 }
  0x49   :  { %v349_v15 = vmul.f32 %v707_v54, %v341_v8  ;;  %v214_v16 = vadd.f32 0.24664073, %v206_v9  ;;  %v207_v37 = vmul.f32 %v663_v12, %v199_v17  ;;  %v192_v7 = vmul.f32 %v672_v23, %v184_v24 }
  0x4a   :  { %v350_v25 = vmul.f32 %v713_v0, %v342_v13  ;;  %v221_v31 = vmul.f32 %v641_v62, %v213_v11  ;;  %v343_v39 = vadd.f32 -0.0036734284, %v335_v26  ;;  %v266_v40 = vmul.f32 %v523_v48, %v683_v35 }
  0x4b   :  { %v357_v36 = vadd.f32 0.0057395077, %v349_v15  ;;  %v222_v41 = vmul.f32 %v645_v63, %v214_v16  ;;  %v215_v42 = vadd.f32 0.24664073, %v207_v37  ;;  %v200_v45 = vadd.f32 -0.0041776816, %v192_v7 }
  0x4c   :  { %v358_v38 = vadd.f32 0.0057395077, %v350_v25  ;;  %v351_v62 = vmul.f32 %v728_v27, %v343_v39  ;;  %v312_v49 = vadd.f32 0.00010095056, %v304_v28  ;;  %v121_v50 = vadd.f32 3.4327394e-07, %v113_v30  ;;  %v529_v28 = vpop.eup %528 }
  0x4d   :  { %v365_v32 = vmul.f32 %v707_v54, %v357_v36  ;;  %v229_v51 = vadd.f32 1.5014094, %v221_v31  ;;  %v273_v48 = vmul.f32 %v525_v4, %v693_v44  ;;  %v223_v60 = vmul.f32 %v663_v12, %v215_v42 }
  0x4e   :  { %v366_v46 = vmul.f32 %v713_v0, %v358_v38  ;;  %v359_v29 = vadd.f32 0.0057395077, %v351_v62  ;;  %v320_v56 = vmul.f32 %v749_v3, %v312_v49  ;;  %v129_v63 = vmul.f32 %v691_v43, %v121_v50 }
  0x4f   :  { %v373_v52 = vadd.f32 -0.0076224613, %v365_v32  ;;  %v208_v61 = vmul.f32 %v672_v23, %v200_v45  ;;  %v268_v1 = vsel %vm267_vm8, %v683_v35, %v266_v40  ;;  %vm429_vm9 = vcmp.lt.f32.partialorder %v632_v55, 5.0 }
  0x50   :  { %v374_v53 = vadd.f32 -0.0076224613, %v366_v46  ;;  %v367_v8 = vmul.f32 %v728_v27, %v359_v29  ;;  %v328_v9 = vadd.f32 0.0013493432, %v320_v56  ;;  %v137_v10 = vadd.f32 -3.5233877e-06, %v129_v63 }
  0x51   :  { %v381_v59 = vmul.f32 %v707_v54, %v373_v52  ;;  %v230_v11 = vadd.f32 1.5014094, %v222_v41  ;;  %vm430_vm10 = vcmp.lt.f32.partialorder %v637_v58, 5.0  ;;  %vm269_vm11 = vcmp.eq.f32.partialorder %v683_v35, 0.0 }
  0x52   :  { %v382_v4 = vmul.f32 %v713_v0, %v374_v53  ;;  %v270_v12 = vand.u32 2147483648, %v683_v35  ;;  %v375_v14 = vadd.f32 -0.0076224613, %v367_v8  ;;  %v336_v15 = vmul.f32 %v749_v3, %v328_v9 }
  0x53   :  { %v389_v34 = vadd.f32 0.0094388705, %v381_v59  ;;  %v145_v16 = vmul.f32 %v691_v43, %v137_v10  ;;  %v231_v24 = vadd.f32 1.5014094, %v223_v60  ;;  %v216_v25 = vadd.f32 0.24664073, %v208_v61 }
  0x54   :  { %v390_v13 = vadd.f32 0.0094388705, %v382_v4  ;;  %v271_v26 = vsel %vm269_vm11, %v270_v12, %v268_v1  ;;  %v383_v31 = vmul.f32 %v728_v27, %v375_v14  ;;  %v344_v36 = vadd.f32 -0.0036734284, %v336_v15 }
  0x55   :  { %v397_v17 = vmul.f32 %v707_v54, %v389_v34  ;;  %v153_v37 = vadd.f32 -4.3915065e-06, %v145_v16  ;;  %vm431_vm12 = vcmp.lt.f32.partialorder %v652_v5, 5.0  ;;  %v791_v38 = vadd.f32 -3.0, %v271_v26 }
  0x56   :  { %v398_v30 = vmul.f32 %v713_v0, %v390_v13  ;;  %v794_v39 = vadd.f32 -2.5, %v693_v44  ;;  %vm274_vm13 = vcmp.eq.f32.partialorder %v693_v44, inf  ;;  %v391_v32 = vadd.f32 0.0094388705, %v383_v31 }
  0x57   :  { %v405_v7 = vadd.f32 1.001674, %v397_v17  ;;  %v352_v41 = vmul.f32 %v749_v3, %v344_v36  ;;  %v161_v42 = vmul.f32 %v691_v43, %v153_v37  ;;  %v224_v46 = vmul.f32 %v672_v23, %v216_v25 }
  0x58   :  { %v406_v40 = vadd.f32 1.001674, %v398_v30  ;;  %v305_v62 = vmul.f32 -0.00020021426, %v791_v38  ;;  %v114_v49 = vmul.f32 2.8102264e-08, %v794_v39  ;;  %v399_v52 = vmul.f32 %v728_v27, %v391_v32 }
  0x59   :  { %v413_v45 = vmul.f32 %v707_v54, %v405_v7  ;;  %v360_v53 = vadd.f32 0.0057395077, %v352_v41  ;;  %v169_v29 = vadd.f32 0.00021858087, %v161_v42  ;;  %v275_v60 = vsel %vm274_vm13, %v693_v44, %v273_v48 }
  0x5a   :  { %v414_v50 = vmul.f32 %v713_v0, %v406_v40  ;;  %v313_v63 = vadd.f32 0.00010095056, %v305_v62  ;;  %v122_v59 = vadd.f32 3.4327394e-07, %v114_v49  ;;  %v407_v61 = vadd.f32 1.001674, %v399_v52 }
  0x5b   :  { %v421_v56 = vadd.f32 2.8329768, %v413_v45  ;;  %v368_v23 = vmul.f32 %v749_v3, %v360_v53  ;;  %v177_v1 = vmul.f32 %v691_v43, %v169_v29  ;;  %vm276_vm14 = vcmp.eq.f32.partialorder %v693_v44, 0.0 }
  0x5c   :  { %v422_v54 = vadd.f32 2.8329768, %v414_v50  ;;  %v321_v4 = vmul.f32 %v791_v38, %v313_v63  ;;  %v130_v8 = vmul.f32 %v794_v39, %v122_v59  ;;  %v415_v10 = vmul.f32 %v728_v27, %v407_v61 }
  0x5d   :  { %v437_v0 = vsel %vm429_vm9, %v229_v51, %v421_v56  ;;  %v376_v34 = vadd.f32 -0.0076224613, %v368_v23  ;;  %v185_v13 = vadd.f32 -0.001253725, %v177_v1  ;;  %v277_v17 = vand.u32 2147483648, %v693_v44 }
  0x5e   :  { %v445_v9 = vmul.f32 %v437_v0, %v606_v18  ;;  %v438_v48 = vsel %vm430_vm10, %v230_v11, %v422_v54  ;;  %v329_v14 = vadd.f32 0.0013493432, %v321_v4  ;;  %v138_v55 = vadd.f32 -3.5233877e-06, %v130_v8 }
  0x5f   :  { %v446_v12 = vmul.f32 %v438_v48, %v608_v19  ;;  %v423_v15 = vadd.f32 2.8329768, %v415_v10  ;;  %v384_v16 = vmul.f32 %v749_v3, %v376_v34  ;;  %v193_v18 = vmul.f32 %v691_v43, %v185_v13 }
  0x60   :  { %v453_v51 = vmul.f32 0.5, %v445_v9  ;;  %v337_v58 = vmul.f32 %v791_v38, %v329_v14  ;;  %v146_v11 = vmul.f32 %v794_v39, %v138_v55  ;;  %v278_v26 = vsel %vm276_vm14, %v277_v17, %v275_v60 }
  0x61   :  { %v454_v25 = vmul.f32 0.5, %v446_v12  ;;  %v439_v19 = vsel %vm431_vm12, %v231_v24, %v423_v15  ;;  %v392_v27 = vadd.f32 0.0094388705, %v384_v16  ;;  %v201_v31 = vadd.f32 -0.0041776816, %v193_v18 }
  0x62   :  { %461 = vst [vmem:[#allocation5] sm:$0xff] %v453_v51  ;;  %v447_v30 = vmul.f32 %v439_v19, %v610_v20  ;;  %v345_v36 = vadd.f32 -0.0036734284, %v337_v58  ;;  %v154_v37 = vadd.f32 -4.3915065e-06, %v146_v11  ;;  %v831_v40 = vadd.f32 -3.0, %v278_v26 }
  0x63   :  { %462 = vst [vmem:[#allocation5 + $0x8] sm:$0xff] %v454_v25  ;;  %v400_v7 = vmul.f32 %v749_v3, %v392_v27  ;;  %v90_v32 = vmul.f32 0.6931472, %v777_v2  ;;  %v92_v41 = vmul.f32 0.6931472, %v529_v28  ;;  %v209_v50 = vmul.f32 %v691_v43, %v201_v31 }
  0x64   :  { %v455_v42 = vmul.f32 0.5, %v447_v30  ;;  %v232_v5 = vadd.f32 1.5014094, %v224_v46  ;;  %v353_v24 = vmul.f32 %v791_v38, %v345_v36  ;;  %v162_v45 = vmul.f32 %v794_v39, %v154_v37 }
  0x65   :  { %v408_v62 = vadd.f32 1.001674, %v400_v7  ;;  %v306_v49 = vmul.f32 -0.00020021426, %v831_v40  ;;  %v837_v20 = vsub.f32 0.0, %v90_v32  ;;  %v840_v29 = vsub.f32 0.0, %v92_v41 }
  0x66   :  { %463 = vst [vmem:[#allocation5 + $0x10] sm:$0xff] %v455_v42  ;;  %v361_v52 = vadd.f32 0.0057395077, %v353_v24  ;;  %v170_v53 = vadd.f32 0.00021858087, %v162_v45  ;;  %vm432_vm15 = vcmp.lt.f32.partialorder %v654_v6, 5.0 }
  0x67   :  { %v416_v2 = vmul.f32 %v749_v3, %v408_v62  ;;  %v314_v28 = vadd.f32 0.00010095056, %v306_v49  ;;  %v844_v46 = vadd.f32 -2.5, %v837_v20  ;;  %530 = vrsqrt.f32 %v837_v20 }
  0x68   :  { %v369_v56 = vmul.f32 %v791_v38, %v361_v52  ;;  %v178_v63 = vmul.f32 %v794_v39, %v170_v53  ;;  %532 = vrsqrt.f32 %v840_v29  ;;  %v217_v1 = vadd.f32 0.24664073, %v209_v50 }
  0x69   :  { %v424_v59 = vadd.f32 2.8329768, %v416_v2  ;;  %v322_v60 = vmul.f32 %v831_v40, %v314_v28  ;;  %v115_v54 = vmul.f32 2.8102264e-08, %v844_v46  ;;  %v859_v34 = vadd.f32 -2.5, %v840_v29 }
  0x6a   :  { %v377_v61 = vadd.f32 -0.0076224613, %v369_v56  ;;  %v186_v23 = vadd.f32 -0.001253725, %v178_v63  ;;  %v225_v14 = vmul.f32 %v691_v43, %v217_v1  ;;  %vm281_vm0 = vcmp.eq.f32.partialorder %v837_v20, inf }
  0x6b   :  { %v440_v3 = vsel %vm432_vm15, %v232_v5, %v424_v59  ;;  %v330_v0 = vadd.f32 0.0013493432, %v322_v60  ;;  %v123_v4 = vadd.f32 3.4327394e-07, %v115_v54  ;;  %v116_v15 = vmul.f32 2.8102264e-08, %v859_v34 }
  0x6c   :  { %v448_v8 = vmul.f32 %v440_v3, %v612_v21  ;;  %v385_v6 = vmul.f32 %v791_v38, %v377_v61  ;;  %v194_v9 = vmul.f32 %v794_v39, %v186_v23  ;;  %v284_v58 = vand.u32 2147483648, %v837_v20 }
  0x6d   :  { %v338_v48 = vmul.f32 %v831_v40, %v330_v0  ;;  %v131_v10 = vmul.f32 %v844_v46, %v123_v4  ;;  %v124_v11 = vadd.f32 3.4327394e-07, %v116_v15  ;;  %vm433_vm1 = vcmp.lt.f32.partialorder %v683_v35, 5.0 }
  0x6e   :  { %v456_v12 = vmul.f32 0.5, %v448_v8  ;;  %v393_v13 = vadd.f32 0.0094388705, %v385_v6  ;;  %v202_v16 = vadd.f32 -0.0041776816, %v194_v9  ;;  %vm283_vm2 = vcmp.eq.f32.partialorder %v837_v20, 0.0 }
  0x6f   :  { %v346_v55 = vadd.f32 -0.0036734284, %v338_v48  ;;  %v139_v51 = vadd.f32 -3.5233877e-06, %v131_v10  ;;  %v233_v27 = vadd.f32 1.5014094, %v225_v14  ;;  %v132_v31 = vmul.f32 %v859_v34, %v124_v11 }
  0x70   :  { %464 = vst [vmem:[#allocation5 + $0x18] sm:$0xff] %v456_v12  ;;  %v401_v21 = vmul.f32 %v791_v38, %v393_v13  ;;  %v210_v7 = vmul.f32 %v794_v39, %v202_v16  ;;  %vm288_vm3 = vcmp.eq.f32.partialorder %v840_v29, inf  ;;  %vm290_vm4 = vcmp.eq.f32.partialorder %v840_v29, 0.0 }
  0x71   :  { %v531_v17 = vpop.eup %530  ;;  %v354_v25 = vmul.f32 %v831_v40, %v346_v55  ;;  %v147_v18 = vmul.f32 %v844_v46, %v139_v51  ;;  %v140_v24 = vadd.f32 -3.5233877e-06, %v132_v31  ;;  %vm434_vm5 = vcmp.lt.f32.partialorder %v693_v44, 5.0 }
  0x72   :  { %v409_v19 = vadd.f32 1.001674, %v401_v21  ;;  %v280_v43 = vmul.f32 %v531_v17, %v837_v20  ;;  %v533_v36 = vpop.eup %532  ;;  %v218_v28 = vadd.f32 0.24664073, %v210_v7  ;;  %vm435_vm6 = vcmp.lt.f32.partialorder %v837_v20, 5.0 }
  0x73   :  { %v362_v26 = vadd.f32 0.0057395077, %v354_v25  ;;  %v155_v30 = vadd.f32 -4.3915065e-06, %v147_v18  ;;  %v287_v49 = vmul.f32 %v533_v36, %v840_v29  ;;  %v148_v53 = vmul.f32 %v859_v34, %v140_v24 }
  0x74   :  { %v417_v37 = vmul.f32 %v791_v38, %v409_v19  ;;  %v282_v32 = vsel %vm281_vm0, %v837_v20, %v280_v43  ;;  %v291_v38 = vand.u32 2147483648, %v840_v29  ;;  %v226_v9 = vmul.f32 %v794_v39, %v218_v28 }
  0x75   :  { %v370_v41 = vmul.f32 %v831_v40, %v362_v26  ;;  %v163_v42 = vmul.f32 %v844_v46, %v155_v30  ;;  %v285_v5 = vsel %vm283_vm2, %v284_v58, %v282_v32  ;;  %v289_v63 = vsel %vm288_vm3, %v840_v29, %v287_v49 }
  0x76   :  { %v425_v45 = vadd.f32 2.8329768, %v417_v37  ;;  %v880_v62 = vadd.f32 -3.0, %v285_v5  ;;  %v156_v61 = vadd.f32 -4.3915065e-06, %v148_v53  ;;  %v292_v3 = vsel %vm290_vm4, %v291_v38, %v289_v63 }
  0x77   :  { %v378_v50 = vadd.f32 -0.0076224613, %v370_v41  ;;  %v171_v52 = vadd.f32 0.00021858087, %v163_v42  ;;  %v499_v6 = vadd.f32 -3.0, %v292_v3  ;;  %vm436_vm7 = vcmp.lt.f32.partialorder %v840_v29, 5.0 }
  0x78   :  { %v441_v2 = vsel %vm433_vm1, %v233_v27, %v425_v45  ;;  %v307_v56 = vmul.f32 -0.00020021426, %v880_v62  ;;  %v164_v35 = vmul.f32 %v859_v34, %v156_v61  ;;  %v234_v21 = vadd.f32 1.5014094, %v226_v9 }
  0x79   :  { %v449_v59 = vmul.f32 %v441_v2, %v614_v22  ;;  %v386_v60 = vmul.f32 %v831_v40, %v378_v50  ;;  %v179_v54 = vmul.f32 %v844_v46, %v171_v52  ;;  %v308_v12 = vmul.f32 -0.00020021426, %v499_v6 }
  0x7a   :  { %v315_v23 = vadd.f32 0.00010095056, %v307_v56  ;;  %v172_v48 = vadd.f32 0.00021858087, %v164_v35 }
  0x7b   :  { %v457_v1 = vmul.f32 0.5, %v449_v59  ;;  %v394_v0 = vadd.f32 0.0094388705, %v386_v60  ;;  %v187_v4 = vadd.f32 -0.001253725, %v179_v54 }
  0x7c   :  { %v323_v8 = vmul.f32 %v880_v62, %v315_v23  ;;  %v180_v14 = vmul.f32 %v859_v34, %v172_v48  ;;  %v316_v15 = vadd.f32 0.00010095056, %v308_v12 }
  0x7d   :  { %465 = vst [vmem:[#allocation5 + $0x20] sm:$0xff] %v457_v1  ;;  %v402_v22 = vmul.f32 %v831_v40, %v394_v0  ;;  %v195_v55 = vmul.f32 %v844_v46, %v187_v4 }
  0x7e   :  { %v331_v10 = vadd.f32 0.0013493432, %v323_v8  ;;  %v188_v39 = vadd.f32 -0.001253725, %v180_v14  ;;  %v324_v25 = vmul.f32 %v499_v6, %v316_v15 }
  0x7f   :  { %v410_v13 = vadd.f32 1.001674, %v402_v22  ;;  %v203_v58 = vadd.f32 -0.0041776816, %v195_v55 }
  0x80   :  { %v339_v51 = vmul.f32 %v880_v62, %v331_v10  ;;  %v332_v19 = vadd.f32 0.0013493432, %v324_v25  ;;  %v196_v30 = vmul.f32 %v859_v34, %v188_v39 }
  0x81   :  { %v418_v16 = vmul.f32 %v831_v40, %v410_v13  ;;  %v211_v40 = vmul.f32 %v844_v46, %v203_v58 }
  0x82   :  { %v347_v17 = vadd.f32 -0.0036734284, %v339_v51  ;;  %v340_v31 = vmul.f32 %v499_v6, %v332_v19  ;;  %v204_v32 = vadd.f32 -0.0041776816, %v196_v30 }
  0x83   :  { %v426_v18 = vadd.f32 2.8329768, %v418_v16  ;;  %v219_v42 = vadd.f32 0.24664073, %v211_v40 }
  0x84   :  { %v355_v11 = vmul.f32 %v880_v62, %v347_v17  ;;  %v348_v37 = vadd.f32 -0.0036734284, %v340_v31 }
  0x85   :  { %v442_v43 = vsel %vm434_vm5, %v234_v21, %v426_v18  ;;  %v227_v38 = vmul.f32 %v844_v46, %v219_v42 }
  0x86   :  { %v450_v27 = vmul.f32 %v442_v43, %v624_v33  ;;  %v363_v26 = vadd.f32 0.0057395077, %v355_v11  ;;  %v356_v41 = vmul.f32 %v499_v6, %v348_v37  ;;  %v212_v33 = vmul.f32 %v859_v34, %v204_v32 }
  0x87   :  { %v235_v56 = vadd.f32 1.5014094, %v227_v38 }
  0x88   :  { %v458_v36 = vmul.f32 0.5, %v450_v27  ;;  %v371_v44 = vmul.f32 %v880_v62, %v363_v26  ;;  %v364_v24 = vadd.f32 0.0057395077, %v356_v41  ;;  %v220_v2 = vadd.f32 0.24664073, %v212_v33 }
  0x8a   :  { %466 = vst [vmem:[#allocation5 + $0x28] sm:$0xff] %v458_v36  ;;  %v379_v7 = vadd.f32 -0.0076224613, %v371_v44  ;;  %v372_v49 = vmul.f32 %v499_v6, %v364_v24  ;;  %v228_v54 = vmul.f32 %v859_v34, %v220_v2 }
  0x8c   :  { %v387_v5 = vmul.f32 %v880_v62, %v379_v7  ;;  %v380_v52 = vadd.f32 -0.0076224613, %v372_v49  ;;  %v236_v1 = vadd.f32 1.5014094, %v228_v54 }
  0x8e   :  { %v395_v45 = vadd.f32 0.0094388705, %v387_v5  ;;  %v388_v28 = vmul.f32 %v499_v6, %v380_v52 }
  0x90   :  { %v403_v50 = vmul.f32 %v880_v62, %v395_v45  ;;  %v396_v59 = vadd.f32 0.0094388705, %v388_v28 }
  0x92   :  { %v411_v53 = vadd.f32 1.001674, %v403_v50  ;;  %v404_v61 = vmul.f32 %v499_v6, %v396_v59 }
  0x94   :  { %v419_v63 = vmul.f32 %v880_v62, %v411_v53  ;;  %v412_v3 = vadd.f32 1.001674, %v404_v61 }
  0x96   :  { %v427_v60 = vadd.f32 2.8329768, %v419_v63  ;;  %v420_v0 = vmul.f32 %v499_v6, %v412_v3 }
  0x98   :  { %v443_v23 = vsel %vm435_vm6, %v235_v56, %v427_v60  ;;  %v428_v4 = vadd.f32 2.8329768, %v420_v0 }
  0x99   :  { %v451_v46 = vmul.f32 %v443_v23, %v630_v47 }
  0x9a   :  { %v444_v8 = vsel %vm436_vm7, %v236_v1, %v428_v4 }
  0x9b   :  { %v459_v35 = vmul.f32 0.5, %v451_v46  ;;  %v452_v20 = vmul.f32 %v444_v8, %v635_v57 }
  0x9d   :  { %467 = vst [vmem:[#allocation5 + $0x30] sm:$0xff] %v459_v35  ;;  %v460_v62 = vmul.f32 0.5, %v452_v20 }
  0x9f   :  { %468 = vst [vmem:[#allocation5 + $0x38] sm:$0xff] %v460_v62 }
  0xa0   :  { %567 = shalt.err (!%p564_p12)
}
  0xa1   :  { %s568_s22 = scalar_lea.hbm %s932_s1, 1024 }
  0xa2   :  { %p569_p13 = scmp.ne.s32.totalorder %s932_s1, %s568_s22  ;;  %p572_p0 = scmp.lt.u32.totalorder %s568_s22, %s932_s1 }
  0xa4   :  { %p574_p1 = pnand %p572_p0, %p569_p13 }
  0xa6   :  { %577 = shalt.err (!%p574_p1)
}
  0xa7   :  { %478 = dma.vmem_to_hbm [thread:$0]  %s476_s18, 1024, %s932_s1, [#allocation4]  }
  0xa8   :  { %580 = dma.done.wait [#allocation4], 1024  }
  0xa9   :  { %581 = vsyncadd [#allocation4], 4294966272 }
  0xaa   :  { %482 = vsyncpa [#allocation3], 1 }
  0xab   :  { %483 = vsyncpa [#allocation4], 1 }

</bundles_post_ra>
